<compile_context>
chip_gen: v7x
topology: tpu7x:2x2x1
jax: 0.10.0
libtpu: 0.0.40
codegen_flags: <defaults>
</compile_context>

<pallas_src>
import functools

import jax
import jax.numpy as jnp
from jax.experimental import pallas as pl
from jax.experimental.pallas import tpu as pltpu


def _sigmoid(z):
    # Plain logistic (matches torch.sigmoid to fp32 precision for the
    # moderate, non-negative activations this model produces).
    return 1.0 / (1.0 + jnp.exp(-z))


def chess_eval_kernel(x_ref, we_ref, w1_ref, w2_ref, o_ref):
    # x_ref : (14, 64, bt)  planes (leading), squares (sublanes), boards (lanes)
    # we_ref: (14, 1)       embedding weight
    # w1_ref: (64, 2)       first-layer weight
    # w2_ref: (2, 1)        second-layer weight
    # o_ref : (1, 1, bt)    per-board scalar outputs, lane-dense
    we = we_ref[...]                                    # (14, 1)
    w1 = w1_ref[...]                                    # (64, 2)
    w2 = w2_ref[...]                                    # (2, 1)

    # Stage 1: per-square embedding = sigmoid(sum_p x[p] * We[p]).
    # Plane axis is the leading (untiled) block axis -> unrolled VPU mul-adds
    # on fully lane-dense (64, bt) vregs; no cross-lane work.
    acc = x_ref[0] * we[0:1, 0:1]                       # (64, bt)
    for p in range(1, 14):
        acc = acc + x_ref[p] * we[p:p + 1, 0:1]
    emb = _sigmoid(acc)                                 # (64, bt)

    # Stage 2: contraction over the 64 squares (sublane reduce), one W1 column
    # at a time so results stay lane-dense per board.
    h0 = _sigmoid(jnp.sum(emb * w1[:, 0:1], axis=0, keepdims=True))   # (1, bt)
    h1 = _sigmoid(jnp.sum(emb * w1[:, 1:2], axis=0, keepdims=True))   # (1, bt)

    # Stage 3: 2-element contraction + affine output transform.
    pre = h0 * w2[0:1, 0:1] + h1 * w2[1:2, 0:1]         # (1, bt)
    out = 2.0 * _sigmoid(pre) - 1.0                     # (1, bt)

    o_ref[...] = out.reshape(o_ref.shape).astype(o_ref.dtype)


@functools.partial(jax.jit, static_argnames=("block_b",))
def chess_board_evaluator_forward_batched(x, w_embedding, w_first, w_second,
                                          *, block_b=256):
    """Evaluate a batch of boards in a single pallas_call.

    x: (B, 64, 14) float32.  Weights as in the PyTorch module:
      w_embedding (14, 1), w_first (64, 2), w_second (2, 1).
    Returns (B, 1, 1) float32 (the per-board (1, 1) outputs stacked).
    """
    assert x.ndim == 3 and x.shape[1:] == (64, 14), x.shape
    bt = int(block_b)
    assert bt % 128 == 0, "block_b must be a multiple of 128 (lane-dense tiles)"
    B = x.shape[0]
    grid_b = pl.cdiv(B, bt)
    b_pad = grid_b * bt
    if b_pad != B:
        x = jnp.pad(x, ((0, b_pad - B), (0, 0), (0, 0)))

    # Layout plumbing only: planes -> leading axis, squares -> sublanes,
    # boards -> lanes.
    x_t = jnp.transpose(x, (2, 1, 0)).astype(jnp.float32)   # (14, 64, b_pad)

    out = pl.pallas_call(
        chess_eval_kernel,
        out_shape=jax.ShapeDtypeStruct((grid_b, 1, bt), jnp.float32),
        grid=(grid_b,),
        in_specs=[
            # One tile of `bt` boards per grid step.
            pl.BlockSpec((14, 64, bt), lambda b: (0, 0, b)),
            # Weights: same block every step -> fetched once, VMEM-resident.
            pl.BlockSpec((14, 1), lambda b: (0, 0)),
            pl.BlockSpec((64, 2), lambda b: (0, 0)),
            pl.BlockSpec((2, 1), lambda b: (0, 0)),
        ],
        out_specs=pl.BlockSpec((1, 1, bt), lambda b: (b, 0, 0)),
        compiler_params=pltpu.CompilerParams(
            dimension_semantics=("parallel",),
        ),
    )(x_t, w_embedding, w_first, w_second)

    # (grid_b, 1, bt) -> (b_pad,) -> (B, 1, 1); padded boards sliced away.
    return out.reshape(b_pad)[:B].reshape(B, 1, 1)


def chess_board_evaluator_forward(x, w_embedding, w_first, w_second):
    """x: (64, 14) -> (1, 1); exactly the PyTorch chess_board_evaluator.forward."""
    out = chess_board_evaluator_forward_batched(
        x[None], w_embedding, w_first, w_second, block_b=128)
    return out[0]


def _reference_forward(x, w_embedding, w_first, w_second):
    emb = jax.nn.sigmoid(x @ w_embedding)                 # (64, 1)
    h = jax.nn.sigmoid(emb.T @ w_first)                   # (1, 2)
    return 2.0 * jax.nn.sigmoid(h @ w_second) - 1.0       # (1, 1)


if __name__ == "__main__":
    key = jax.random.PRNGKey(0)
    k_in, k_we, k_w1, k_w2 = jax.random.split(key, 4)

    # Deterministic params, mirroring torch.nn.init.uniform_ on the __init__ shapes.
    w_embedding = jax.random.uniform(k_we, (14, 1), dtype=jnp.float32)
    w_first = jax.random.uniform(k_w1, (64, 2), dtype=jnp.float32)
    w_second = jax.random.uniform(k_w2, (2, 1), dtype=jnp.float32)

    # 1) Single board, exactly the PyTorch forward signature: (64, 14) -> (1, 1).
    x_single = jax.random.uniform(k_in, (64, 14), dtype=jnp.float32)
    out_single = chess_board_evaluator_forward(x_single, w_embedding, w_first, w_second)
    out_single = jax.block_until_ready(out_single)
    ref_single = _reference_forward(x_single, w_embedding, w_first, w_second)
    assert out_single.shape == (1, 1)
    assert jnp.allclose(out_single, ref_single, atol=1e-5, rtol=1e-5)

    # 2) Batched throughput path: 512 boards -> two grid tiles of 256.
    B = 512
    x_batch = jax.random.uniform(k_in, (B, 64, 14), dtype=jnp.float32)
    out_batch = chess_board_evaluator_forward_batched(
        x_batch, w_embedding, w_first, w_second, block_b=256)
    out_batch = jax.block_until_ready(out_batch)
    ref_batch = jax.vmap(
        lambda xb: _reference_forward(xb, w_embedding, w_first, w_second))(x_batch)
    assert out_batch.shape == (B, 1, 1)
    assert jnp.allclose(out_batch, ref_batch, atol=1e-5, rtol=1e-5)

    print("KERNEL_OK")
</pallas_src>

<mosaic_0001>
module attributes {stable_mosaic.version = 11 : i64} {
  func.func @chess_eval_kernel(%arg0: i32, %arg1: memref<14x64x128xf32, #tpu.memory_space<vmem>>, %arg2: memref<14x1xf32, #tpu.memory_space<vmem>>, %arg3: memref<64x2xf32, #tpu.memory_space<vmem>>, %arg4: memref<2x1xf32, #tpu.memory_space<vmem>>, %arg5: memref<1x1x128xf32, #tpu.memory_space<vmem>>) attributes {dimension_semantics = [#tpu.dimension_semantics<parallel>], iteration_bounds = array<i64: 1>, scalar_prefetch = 0 : i64, scratch_operands = 0 : i64, tpu.core_type = #tpu.core_type<tc>, window_params = [{transform_indices = @transform_0, window_bounds = array<i64: 14, 64, 128>}, {pipeline_mode = #tpu.pipeline_mode<synchronous>, transform_indices = @transform_1, window_bounds = array<i64: 14, 1>}, {pipeline_mode = #tpu.pipeline_mode<synchronous>, transform_indices = @transform_2, window_bounds = array<i64: 64, 2>}, {pipeline_mode = #tpu.pipeline_mode<synchronous>, transform_indices = @transform_3, window_bounds = array<i64: 2, 1>}, {transform_indices = @transform_4, window_bounds = array<i64: 1, 1, 128>}]} {
    %c0 = arith.constant 0 : index
    %c0_0 = arith.constant 0 : index
    %0 = vector.load %arg2[%c0, %c0_0] : memref<14x1xf32, #tpu.memory_space<vmem>>, vector<14x1xf32>
    %c0_1 = arith.constant 0 : index
    %c0_2 = arith.constant 0 : index
    %1 = vector.load %arg3[%c0_1, %c0_2] : memref<64x2xf32, #tpu.memory_space<vmem>>, vector<64x2xf32>
    %c0_3 = arith.constant 0 : index
    %c0_4 = arith.constant 0 : index
    %2 = vector.load %arg4[%c0_3, %c0_4] : memref<2x1xf32, #tpu.memory_space<vmem>>, vector<2x1xf32>
    %c0_5 = arith.constant 0 : index
    %c0_6 = arith.constant 0 : index
    %c0_7 = arith.constant 0 : index
    %3 = vector.load %arg1[%c0_5, %c0_6, %c0_7] : memref<14x64x128xf32, #tpu.memory_space<vmem>>, vector<1x64x128xf32>
    %4 = vector.shape_cast %3 : vector<1x64x128xf32> to vector<64x128xf32>
    %5 = vector.extract_strided_slice %0 {offsets = [0, 0], sizes = [1, 1], strides = [1, 1]} : vector<14x1xf32> to vector<1x1xf32>
    %6 = vector.broadcast %5 : vector<1x1xf32> to vector<64x128xf32>
    %7 = arith.mulf %4, %6 : vector<64x128xf32>
    %c1 = arith.constant 1 : index
    %c0_8 = arith.constant 0 : index
    %c0_9 = arith.constant 0 : index
    %8 = vector.load %arg1[%c1, %c0_8, %c0_9] : memref<14x64x128xf32, #tpu.memory_space<vmem>>, vector<1x64x128xf32>
    %9 = vector.shape_cast %8 : vector<1x64x128xf32> to vector<64x128xf32>
    %10 = vector.extract_strided_slice %0 {offsets = [1, 0], sizes = [1, 1], strides = [1, 1]} : vector<14x1xf32> to vector<1x1xf32>
    %11 = vector.broadcast %10 : vector<1x1xf32> to vector<64x128xf32>
    %12 = arith.mulf %9, %11 : vector<64x128xf32>
    %13 = arith.addf %7, %12 : vector<64x128xf32>
    %c2 = arith.constant 2 : index
    %c0_10 = arith.constant 0 : index
    %c0_11 = arith.constant 0 : index
    %14 = vector.load %arg1[%c2, %c0_10, %c0_11] : memref<14x64x128xf32, #tpu.memory_space<vmem>>, vector<1x64x128xf32>
    %15 = vector.shape_cast %14 : vector<1x64x128xf32> to vector<64x128xf32>
    %16 = vector.extract_strided_slice %0 {offsets = [2, 0], sizes = [1, 1], strides = [1, 1]} : vector<14x1xf32> to vector<1x1xf32>
    %17 = vector.broadcast %16 : vector<1x1xf32> to vector<64x128xf32>
    %18 = arith.mulf %15, %17 : vector<64x128xf32>
    %19 = arith.addf %13, %18 : vector<64x128xf32>
    %c3 = arith.constant 3 : index
    %c0_12 = arith.constant 0 : index
    %c0_13 = arith.constant 0 : index
    %20 = vector.load %arg1[%c3, %c0_12, %c0_13] : memref<14x64x128xf32, #tpu.memory_space<vmem>>, vector<1x64x128xf32>
    %21 = vector.shape_cast %20 : vector<1x64x128xf32> to vector<64x128xf32>
    %22 = vector.extract_strided_slice %0 {offsets = [3, 0], sizes = [1, 1], strides = [1, 1]} : vector<14x1xf32> to vector<1x1xf32>
    %23 = vector.broadcast %22 : vector<1x1xf32> to vector<64x128xf32>
    %24 = arith.mulf %21, %23 : vector<64x128xf32>
    %25 = arith.addf %19, %24 : vector<64x128xf32>
    %c4 = arith.constant 4 : index
    %c0_14 = arith.constant 0 : index
    %c0_15 = arith.constant 0 : index
    %26 = vector.load %arg1[%c4, %c0_14, %c0_15] : memref<14x64x128xf32, #tpu.memory_space<vmem>>, vector<1x64x128xf32>
    %27 = vector.shape_cast %26 : vector<1x64x128xf32> to vector<64x128xf32>
    %28 = vector.extract_strided_slice %0 {offsets = [4, 0], sizes = [1, 1], strides = [1, 1]} : vector<14x1xf32> to vector<1x1xf32>
    %29 = vector.broadcast %28 : vector<1x1xf32> to vector<64x128xf32>
    %30 = arith.mulf %27, %29 : vector<64x128xf32>
    %31 = arith.addf %25, %30 : vector<64x128xf32>
    %c5 = arith.constant 5 : index
    %c0_16 = arith.constant 0 : index
    %c0_17 = arith.constant 0 : index
    %32 = vector.load %arg1[%c5, %c0_16, %c0_17] : memref<14x64x128xf32, #tpu.memory_space<vmem>>, vector<1x64x128xf32>
    %33 = vector.shape_cast %32 : vector<1x64x128xf32> to vector<64x128xf32>
    %34 = vector.extract_strided_slice %0 {offsets = [5, 0], sizes = [1, 1], strides = [1, 1]} : vector<14x1xf32> to vector<1x1xf32>
    %35 = vector.broadcast %34 : vector<1x1xf32> to vector<64x128xf32>
    %36 = arith.mulf %33, %35 : vector<64x128xf32>
    %37 = arith.addf %31, %36 : vector<64x128xf32>
    %c6 = arith.constant 6 : index
    %c0_18 = arith.constant 0 : index
    %c0_19 = arith.constant 0 : index
    %38 = vector.load %arg1[%c6, %c0_18, %c0_19] : memref<14x64x128xf32, #tpu.memory_space<vmem>>, vector<1x64x128xf32>
    %39 = vector.shape_cast %38 : vector<1x64x128xf32> to vector<64x128xf32>
    %40 = vector.extract_strided_slice %0 {offsets = [6, 0], sizes = [1, 1], strides = [1, 1]} : vector<14x1xf32> to vector<1x1xf32>
    %41 = vector.broadcast %40 : vector<1x1xf32> to vector<64x128xf32>
    %42 = arith.mulf %39, %41 : vector<64x128xf32>
    %43 = arith.addf %37, %42 : vector<64x128xf32>
    %c7 = arith.constant 7 : index
    %c0_20 = arith.constant 0 : index
    %c0_21 = arith.constant 0 : index
    %44 = vector.load %arg1[%c7, %c0_20, %c0_21] : memref<14x64x128xf32, #tpu.memory_space<vmem>>, vector<1x64x128xf32>
    %45 = vector.shape_cast %44 : vector<1x64x128xf32> to vector<64x128xf32>
    %46 = vector.extract_strided_slice %0 {offsets = [7, 0], sizes = [1, 1], strides = [1, 1]} : vector<14x1xf32> to vector<1x1xf32>
    %47 = vector.broadcast %46 : vector<1x1xf32> to vector<64x128xf32>
    %48 = arith.mulf %45, %47 : vector<64x128xf32>
    %49 = arith.addf %43, %48 : vector<64x128xf32>
    %c8 = arith.constant 8 : index
    %c0_22 = arith.constant 0 : index
    %c0_23 = arith.constant 0 : index
    %50 = vector.load %arg1[%c8, %c0_22, %c0_23] : memref<14x64x128xf32, #tpu.memory_space<vmem>>, vector<1x64x128xf32>
    %51 = vector.shape_cast %50 : vector<1x64x128xf32> to vector<64x128xf32>
    %52 = vector.extract_strided_slice %0 {offsets = [8, 0], sizes = [1, 1], strides = [1, 1]} : vector<14x1xf32> to vector<1x1xf32>
    %53 = vector.broadcast %52 : vector<1x1xf32> to vector<64x128xf32>
    %54 = arith.mulf %51, %53 : vector<64x128xf32>
    %55 = arith.addf %49, %54 : vector<64x128xf32>
    %c9 = arith.constant 9 : index
    %c0_24 = arith.constant 0 : index
    %c0_25 = arith.constant 0 : index
    %56 = vector.load %arg1[%c9, %c0_24, %c0_25] : memref<14x64x128xf32, #tpu.memory_space<vmem>>, vector<1x64x128xf32>
    %57 = vector.shape_cast %56 : vector<1x64x128xf32> to vector<64x128xf32>
    %58 = vector.extract_strided_slice %0 {offsets = [9, 0], sizes = [1, 1], strides = [1, 1]} : vector<14x1xf32> to vector<1x1xf32>
    %59 = vector.broadcast %58 : vector<1x1xf32> to vector<64x128xf32>
    %60 = arith.mulf %57, %59 : vector<64x128xf32>
    %61 = arith.addf %55, %60 : vector<64x128xf32>
    %c10 = arith.constant 10 : index
    %c0_26 = arith.constant 0 : index
    %c0_27 = arith.constant 0 : index
    %62 = vector.load %arg1[%c10, %c0_26, %c0_27] : memref<14x64x128xf32, #tpu.memory_space<vmem>>, vector<1x64x128xf32>
    %63 = vector.shape_cast %62 : vector<1x64x128xf32> to vector<64x128xf32>
    %64 = vector.extract_strided_slice %0 {offsets = [10, 0], sizes = [1, 1], strides = [1, 1]} : vector<14x1xf32> to vector<1x1xf32>
    %65 = vector.broadcast %64 : vector<1x1xf32> to vector<64x128xf32>
    %66 = arith.mulf %63, %65 : vector<64x128xf32>
    %67 = arith.addf %61, %66 : vector<64x128xf32>
    %c11 = arith.constant 11 : index
    %c0_28 = arith.constant 0 : index
    %c0_29 = arith.constant 0 : index
    %68 = vector.load %arg1[%c11, %c0_28, %c0_29] : memref<14x64x128xf32, #tpu.memory_space<vmem>>, vector<1x64x128xf32>
    %69 = vector.shape_cast %68 : vector<1x64x128xf32> to vector<64x128xf32>
    %70 = vector.extract_strided_slice %0 {offsets = [11, 0], sizes = [1, 1], strides = [1, 1]} : vector<14x1xf32> to vector<1x1xf32>
    %71 = vector.broadcast %70 : vector<1x1xf32> to vector<64x128xf32>
    %72 = arith.mulf %69, %71 : vector<64x128xf32>
    %73 = arith.addf %67, %72 : vector<64x128xf32>
    %c12 = arith.constant 12 : index
    %c0_30 = arith.constant 0 : index
    %c0_31 = arith.constant 0 : index
    %74 = vector.load %arg1[%c12, %c0_30, %c0_31] : memref<14x64x128xf32, #tpu.memory_space<vmem>>, vector<1x64x128xf32>
    %75 = vector.shape_cast %74 : vector<1x64x128xf32> to vector<64x128xf32>
    %76 = vector.extract_strided_slice %0 {offsets = [12, 0], sizes = [1, 1], strides = [1, 1]} : vector<14x1xf32> to vector<1x1xf32>
    %77 = vector.broadcast %76 : vector<1x1xf32> to vector<64x128xf32>
    %78 = arith.mulf %75, %77 : vector<64x128xf32>
    %79 = arith.addf %73, %78 : vector<64x128xf32>
    %c13 = arith.constant 13 : index
    %c0_32 = arith.constant 0 : index
    %c0_33 = arith.constant 0 : index
    %80 = vector.load %arg1[%c13, %c0_32, %c0_33] : memref<14x64x128xf32, #tpu.memory_space<vmem>>, vector<1x64x128xf32>
    %81 = vector.shape_cast %80 : vector<1x64x128xf32> to vector<64x128xf32>
    %82 = vector.extract_strided_slice %0 {offsets = [13, 0], sizes = [1, 1], strides = [1, 1]} : vector<14x1xf32> to vector<1x1xf32>
    %83 = vector.broadcast %82 : vector<1x1xf32> to vector<64x128xf32>
    %84 = arith.mulf %81, %83 : vector<64x128xf32>
    %85 = arith.addf %79, %84 : vector<64x128xf32>
    %cst = arith.constant 0.000000e+00 : f32
    %86 = vector.broadcast %cst : f32 to vector<64x128xf32>
    %87 = arith.subf %86, %85 : vector<64x128xf32>
    %88 = math.exp %87 : vector<64x128xf32>
    %cst_34 = arith.constant 1.000000e+00 : f32
    %89 = vector.broadcast %cst_34 : f32 to vector<64x128xf32>
    %90 = arith.addf %89, %88 : vector<64x128xf32>
    %cst_35 = arith.constant 1.000000e+00 : f32
    %91 = vector.broadcast %cst_35 : f32 to vector<64x128xf32>
    %92 = arith.divf %91, %90 : vector<64x128xf32>
    %93 = vector.extract_strided_slice %1 {offsets = [0, 0], sizes = [64, 1], strides = [1, 1]} : vector<64x2xf32> to vector<64x1xf32>
    %94 = vector.broadcast %93 : vector<64x1xf32> to vector<64x128xf32>
    %95 = arith.mulf %92, %94 : vector<64x128xf32>
    %cst_36 = arith.constant dense<0.000000e+00> : vector<128xf32>
    %96 = vector.multi_reduction <add>, %95, %cst_36 [0] : vector<64x128xf32> to vector<128xf32>
    %97 = vector.shape_cast %96 : vector<128xf32> to vector<1x128xf32>
    %cst_37 = arith.constant 0.000000e+00 : f32
    %98 = vector.broadcast %cst_37 : f32 to vector<1x128xf32>
    %99 = arith.subf %98, %97 : vector<1x128xf32>
    %100 = math.exp %99 : vector<1x128xf32>
    %cst_38 = arith.constant 1.000000e+00 : f32
    %101 = vector.broadcast %cst_38 : f32 to vector<1x128xf32>
    %102 = arith.addf %101, %100 : vector<1x128xf32>
    %cst_39 = arith.constant 1.000000e+00 : f32
    %103 = vector.broadcast %cst_39 : f32 to vector<1x128xf32>
    %104 = arith.divf %103, %102 : vector<1x128xf32>
    %105 = vector.extract_strided_slice %1 {offsets = [0, 1], sizes = [64, 1], strides = [1, 1]} : vector<64x2xf32> to vector<64x1xf32>
    %106 = vector.broadcast %105 : vector<64x1xf32> to vector<64x128xf32>
    %107 = arith.mulf %92, %106 : vector<64x128xf32>
    %cst_40 = arith.constant dense<0.000000e+00> : vector<128xf32>
    %108 = vector.multi_reduction <add>, %107, %cst_40 [0] : vector<64x128xf32> to vector<128xf32>
    %109 = vector.shape_cast %108 : vector<128xf32> to vector<1x128xf32>
    %cst_41 = arith.constant 0.000000e+00 : f32
    %110 = vector.broadcast %cst_41 : f32 to vector<1x128xf32>
    %111 = arith.subf %110, %109 : vector<1x128xf32>
    %112 = math.exp %111 : vector<1x128xf32>
    %cst_42 = arith.constant 1.000000e+00 : f32
    %113 = vector.broadcast %cst_42 : f32 to vector<1x128xf32>
    %114 = arith.addf %113, %112 : vector<1x128xf32>
    %cst_43 = arith.constant 1.000000e+00 : f32
    %115 = vector.broadcast %cst_43 : f32 to vector<1x128xf32>
    %116 = arith.divf %115, %114 : vector<1x128xf32>
    %117 = vector.extract_strided_slice %2 {offsets = [0, 0], sizes = [1, 1], strides = [1, 1]} : vector<2x1xf32> to vector<1x1xf32>
    %118 = vector.broadcast %117 : vector<1x1xf32> to vector<1x128xf32>
    %119 = arith.mulf %104, %118 : vector<1x128xf32>
    %120 = vector.extract_strided_slice %2 {offsets = [1, 0], sizes = [1, 1], strides = [1, 1]} : vector<2x1xf32> to vector<1x1xf32>
    %121 = vector.broadcast %120 : vector<1x1xf32> to vector<1x128xf32>
    %122 = arith.mulf %116, %121 : vector<1x128xf32>
    %123 = arith.addf %119, %122 : vector<1x128xf32>
    %cst_44 = arith.constant 0.000000e+00 : f32
    %124 = vector.broadcast %cst_44 : f32 to vector<1x128xf32>
    %125 = arith.subf %124, %123 : vector<1x128xf32>
    %126 = math.exp %125 : vector<1x128xf32>
    %cst_45 = arith.constant 1.000000e+00 : f32
    %127 = vector.broadcast %cst_45 : f32 to vector<1x128xf32>
    %128 = arith.addf %127, %126 : vector<1x128xf32>
    %cst_46 = arith.constant 1.000000e+00 : f32
    %129 = vector.broadcast %cst_46 : f32 to vector<1x128xf32>
    %130 = arith.divf %129, %128 : vector<1x128xf32>
    %cst_47 = arith.constant 2.000000e+00 : f32
    %131 = vector.broadcast %cst_47 : f32 to vector<1x128xf32>
    %132 = arith.mulf %131, %130 : vector<1x128xf32>
    %cst_48 = arith.constant 1.000000e+00 : f32
    %133 = vector.broadcast %cst_48 : f32 to vector<1x128xf32>
    %134 = arith.subf %132, %133 : vector<1x128xf32>
    %135 = vector.shape_cast %134 : vector<1x128xf32> to vector<1x1x128xf32>
    %c0_49 = arith.constant 0 : index
    %c0_50 = arith.constant 0 : index
    %c0_51 = arith.constant 0 : index
    %136 = vector.load %arg5[%c0_49, %c0_50, %c0_51] : memref<1x1x128xf32, #tpu.memory_space<vmem>>, vector<1x1x128xf32>
    tpu.vector_store %arg5[%c0_49, %c0_50, %c0_51], %135 {strides = array<i32>} : memref<1x1x128xf32, #tpu.memory_space<vmem>>, vector<1x1x128xf32>,
    return
  }
  func.func @transform_0(%arg0: i32) -> (i32, i32, i32) {
    %c0_i32 = arith.constant 0 : i32
    %c0_i32_0 = arith.constant 0 : i32
    %c0_i32_1 = arith.constant 0 : i32
    return %c0_i32, %c0_i32_0, %arg0 : i32, i32, i32
  }
  func.func @transform_1(%arg0: i32) -> (i32, i32) {
    %c0_i32 = arith.constant 0 : i32
    %c0_i32_0 = arith.constant 0 : i32
    %c0_i32_1 = arith.constant 0 : i32
    return %c0_i32, %c0_i32_0 : i32, i32
  }
  func.func @transform_2(%arg0: i32) -> (i32, i32) {
    %c0_i32 = arith.constant 0 : i32
    %c0_i32_0 = arith.constant 0 : i32
    %c0_i32_1 = arith.constant 0 : i32
    return %c0_i32, %c0_i32_0 : i32, i32
  }
  func.func @transform_3(%arg0: i32) -> (i32, i32) {
    %c0_i32 = arith.constant 0 : i32
    %c0_i32_0 = arith.constant 0 : i32
    %c0_i32_1 = arith.constant 0 : i32
    return %c0_i32, %c0_i32_0 : i32, i32
  }
  func.func @transform_4(%arg0: i32) -> (i32, i32, i32) {
    %c0_i32 = arith.constant 0 : i32
    %c0_i32_0 = arith.constant 0 : i32
    %c0_i32_1 = arith.constant 0 : i32
    return %arg0, %c0_i32, %c0_i32_0 : i32, i32, i32
  }
}

</mosaic_0001>

<bundles_post_ra>
// kernel: chess_board_evaluator_forward_batched.1
= control target key start
LH: loop header
LB: loop body
LE: loop exit
PB: predicated region body
PF: predicated region fallthrough
CT: control target
= control target key end

     0   :  { %v841_v1 = vmov 1   ;;  %v842_v2 = vmov 0   ;;  %s1276_s0 = inlined_call_operand.vmem [shape: f32[14,64,128], index: 0, kind: input, shape index: {}]   ;;  %s1277_s1 = inlined_call_operand.vmem [shape: f32[14,1], index: 1, kind: input, shape index: {}]   ;;  %s1278_s2 = inlined_call_operand.vmem [shape: f32[64,2], index: 2, kind: input, shape index: {}]   ;;  %s1279_s3 = inlined_call_operand.vmem [shape: f32[2,1], index: 3, kind: input, shape index: {}]   ;;  %s1280_s4 = inlined_call_operand.hbm [shape: f32[1,1,128], index: 4, kind: output, shape index: {}]  }
   0x1   :  { %v20_v0 = vld [vmem:[%s1278_s2] sm:$0xff]  ;;  %770 = vset.pattern.permute.xlu0 %v841_v1  ;;  %771 = vset.pattern.permute.xlu1 %v842_v2  ;;  %v21_v4 = vld [vmem:[%s1278_s2 + $0x8] sm:$0xff]  ;;  %v22_v12 = vld [vmem:[%s1278_s2 + $0x10] sm:$0xff] }
   0x2   :  { %476 = vperm.xlu1 %771, %v20_v0   ;;  %542 = vperm.xlu0 %770, %v20_v0   ;;  %v18_v3 = vld [vmem:[%s1277_s1] sm:$0xff]  ;;  %v19_v11 = vld [vmem:[%s1277_s1 + $0x8] sm:$0x3f]  ;;  %v23_v16 = vld [vmem:[%s1278_s2 + $0x18] sm:$0xff] }
   0x3   :  { %739 = vpush %v18_v3  ;;  %v58_v5 = vrot.slane %v18_v3, 1  ;;  %v87_v6 = vrot.slane %v18_v3, 2  ;;  %v116_v7 = vrot.slane %v18_v3, 3  ;;  %v145_v8 = vrot.slane %v18_v3, 4  ;;  %v24_v20 = vld [vmem:[%s1278_s2 + $0x20] sm:$0xff]  ;;  %v25_v21 = vld [vmem:[%s1278_s2 + $0x28] sm:$0xff] }
   0x4   :  { %v174_v9 = vrot.slane %v18_v3, 5  ;;  %v203_v10 = vrot.slane %v18_v3, 6  ;;  %v232_v13 = vrot.slane %v18_v3, 7  ;;  %v290_v14 = vrot.slane %v19_v11, 1  ;;  %v26_v22 = vld [vmem:[%s1278_s2 + $0x30] sm:$0xff]  ;;  %v27_v23 = vld [vmem:[%s1278_s2 + $0x38] sm:$0xff] }
   0x5   :  { %741 = vpush %v58_v5  ;;  %v319_v15 = vrot.slane %v19_v11, 2  ;;  %v348_v17 = vrot.slane %v19_v11, 3  ;;  %v377_v18 = vrot.slane %v19_v11, 4  ;;  %v406_v19 = vrot.slane %v19_v11, 5  ;;  %v28_v24 = vld [vmem:[%s1279_s3] sm:$0x3] }
   0x6   :  { %481 = vperm.xlu1 %771, %v21_v4   ;;  %546 = vperm.xlu0 %770, %v21_v4   ;;  %743 = vpush %v87_v6 }
   0x7   :  { %745 = vpush %v116_v7 }
   0x8   :  { %747 = vpush %v145_v8 }
   0x9   :  { %749 = vpush %v174_v9 }
   0xa   :  { %486 = vperm.xlu1 %771, %v22_v12   ;;  %550 = vperm.xlu0 %770, %v22_v12   ;;  %751 = vpush %v203_v10 }
   0xb   :  { %753 = vpush %v232_v13 }
   0xc   :  { %755 = vpush %v19_v11 }
   0xd   :  { %757 = vpush %v290_v14 }
   0xe   :  { %491 = vperm.xlu1 %771, %v23_v16   ;;  %554 = vperm.xlu0 %770, %v23_v16   ;;  %759 = vpush %v319_v15 }
   0xf   :  { %761 = vpush %v348_v17 }
  0x10   :  { %763 = vpush %v377_v18 }
  0x11   :  { %765 = vpush %v406_v19 }
  0x12   :  { %496 = vperm.xlu1 %771, %v24_v20   ;;  %558 = vperm.xlu0 %770, %v24_v20  }
  0x16   :  { %501 = vperm.xlu1 %771, %v25_v21   ;;  %562 = vperm.xlu0 %770, %v25_v21  }
  0x1a   :  { %506 = vperm.xlu1 %771, %v26_v22   ;;  %566 = vperm.xlu0 %770, %v26_v22  }
  0x1e   :  { %511 = vperm.xlu1 %771, %v27_v23   ;;  %570 = vperm.xlu0 %770, %v27_v23  }
  0x22   :  { %772 = vset.pattern.permute.xlu0 %v842_v2 }
  0x23   :  { %602 = vperm.xlu0 %772, %v28_v24  }
  0x24   :  { %9 = vsyncpa [#allocation3], 0  ;;  %v29_v25 = vld [vmem:[%s1276_s0] sm:$0xff]  ;;  %v30_v26 = vld [vmem:[%s1276_s0 + $0x8] sm:$0xff] }
  0x25   :  { %v31_v27 = vld [vmem:[%s1276_s0 + $0x10] sm:$0xff]  ;;  %v32_v28 = vld [vmem:[%s1276_s0 + $0x18] sm:$0xff]  ;;  %v33_v29 = vld [vmem:[%s1276_s0 + $0x20] sm:$0xff] }
  0x26   :  { %v34_v30 = vld [vmem:[%s1276_s0 + $0x28] sm:$0xff]  ;;  %v35_v31 = vld [vmem:[%s1276_s0 + $0x30] sm:$0xff]  ;;  %v36_v32 = vld [vmem:[%s1276_s0 + $0x38] sm:$0xff] }
  0x27   :  { %v634_v34 = vld [vmem:[%s1276_s0 + $0x40] sm:$0xff]  ;;  %v635_v35 = vld [vmem:[%s1276_s0 + $0x48] sm:$0xff]  ;;  %v636_v38 = vld [vmem:[%s1276_s0 + $0x50] sm:$0xff] }
  0x28   :  { %v637_v39 = vld [vmem:[%s1276_s0 + $0x58] sm:$0xff]  ;;  %v638_v40 = vld [vmem:[%s1276_s0 + $0x60] sm:$0xff]  ;;  %v639_v45 = vld [vmem:[%s1276_s0 + $0x68] sm:$0xff] }
  0x29   :  { %v640_v46 = vld [vmem:[%s1276_s0 + $0x70] sm:$0xff]  ;;  %v641_v47 = vld [vmem:[%s1276_s0 + $0x78] sm:$0xff]  ;;  %v642_v56 = vld [vmem:[%s1276_s0 + $0x80] sm:$0xff] }
  0x2a   :  { %v643_v57 = vld [vmem:[%s1276_s0 + $0x88] sm:$0xff]  ;;  %v644_v62 = vld [vmem:[%s1276_s0 + $0x90] sm:$0xff]  ;;  %v645_v63 = vld [vmem:[%s1276_s0 + $0x98] sm:$0xff] }
  0x2b   :  { %v646_v0 = vld [vmem:[%s1276_s0 + $0xa0] sm:$0xff]  ;;  %v647_v5 = vld [vmem:[%s1276_s0 + $0xa8] sm:$0xff]  ;;  %v648_v6 = vld [vmem:[%s1276_s0 + $0xb0] sm:$0xff] }
  0x2c   :  { %v649_v7 = vld [vmem:[%s1276_s0 + $0xb8] sm:$0xff]  ;;  %v650_v20 = vld [vmem:[%s1276_s0 + $0xc0] sm:$0xff]  ;;  %v651_v21 = vld [vmem:[%s1276_s0 + $0xc8] sm:$0xff] }
  0x34   :  { %s740_s22 = spop %739 }
  0x35   :  { %v39_v33 = vstv %s740_s22 }
  0x36   :  { %v41_v36 = vmul.f32 %v39_v33, %v29_v25  ;;  %v42_v37 = vmul.f32 %v39_v33, %v30_v26  ;;  %s742_s8 = spop %741  ;;  %v43_v41 = vmul.f32 %v39_v33, %v31_v27  ;;  %v44_v42 = vmul.f32 %v39_v33, %v32_v28  ;;  %v652_v26 = vld [vmem:[%s1276_s0 + $0xd0] sm:$0xff]  ;;  %v653_v27 = vld [vmem:[%s1276_s0 + $0xd8] sm:$0xff]  ;;  %v654_v28 = vld [vmem:[%s1276_s0 + $0xe0] sm:$0xff] }
  0x37   :  { %v45_v43 = vmul.f32 %v39_v33, %v33_v29  ;;  %v46_v44 = vmul.f32 %v39_v33, %v34_v30  ;;  %s744_s15 = spop %743  ;;  %v47_v48 = vmul.f32 %v39_v33, %v35_v31  ;;  %v48_v49 = vmul.f32 %v39_v33, %v36_v32  ;;  %v655_v33 = vld [vmem:[%s1276_s0 + $0xe8] sm:$0xff] }
  0x38   :  { %v60_v50 = vstv %s742_s8  ;;  %v89_v51 = vstv %s744_s15  ;;  %s974_s29 = spop %745 }
  0x39   :  { %v62_v52 = vmul.f32 %v634_v34, %v60_v50  ;;  %v63_v53 = vmul.f32 %v635_v35, %v60_v50  ;;  %v64_v54 = vmul.f32 %v636_v38, %v60_v50  ;;  %v65_v55 = vmul.f32 %v637_v39, %v60_v50  ;;  %s748_s30 = spop %747  ;;  %v656_v34 = vld [vmem:[%s1276_s0 + $0xf0] sm:$0xff]  ;;  %v657_v35 = vld [vmem:[%s1276_s0 + $0xf8] sm:$0xff] }
  0x3a   :  { %v66_v58 = vmul.f32 %v638_v40, %v60_v50  ;;  %v67_v59 = vmul.f32 %v639_v45, %v60_v50  ;;  %v68_v60 = vmul.f32 %v640_v46, %v60_v50  ;;  %v69_v61 = vmul.f32 %v641_v47, %v60_v50  ;;  %s750_s5 = spop %749  ;;  %v659_v45 = vld [vmem:[%s1276_s0 + $0x108] sm:$0xff]  ;;  %v660_v50 = vld [vmem:[%s1276_s0 + $0x110] sm:$0xff] }
  0x3b   :  { %v70_v1 = vadd.f32 %v62_v52, %v41_v36  ;;  %v71_v2 = vadd.f32 %v63_v53, %v42_v37  ;;  %v72_v3 = vadd.f32 %v64_v54, %v43_v41  ;;  %v73_v4 = vadd.f32 %v65_v55, %v44_v42  ;;  %s752_s10 = spop %751  ;;  %v662_v52 = vld [vmem:[%s1276_s0 + $0x120] sm:$0xff] }
  0x3c   :  { %v74_v8 = vadd.f32 %v66_v58, %v45_v43  ;;  %v75_v9 = vadd.f32 %v67_v59, %v46_v44  ;;  %v76_v10 = vadd.f32 %v68_v60, %v47_v48  ;;  %v77_v11 = vadd.f32 %v69_v61, %v48_v49  ;;  %v658_v44 = vld [vmem:[%s1276_s0 + $0x100] sm:$0xff]  ;;  %v664_v58 = vld [vmem:[%s1276_s0 + $0x130] sm:$0xff]  ;;  %v665_v59 = vld [vmem:[%s1276_s0 + $0x138] sm:$0xff]  ;;  %s1075_s13 = spop %753 }
  0x3d   :  { %v91_v12 = vmul.f32 %v642_v56, %v89_v51  ;;  %v92_v13 = vmul.f32 %v643_v57, %v89_v51  ;;  %v93_v14 = vmul.f32 %v644_v62, %v89_v51  ;;  %v94_v15 = vmul.f32 %v645_v63, %v89_v51  ;;  %v663_v57 = vld [vmem:[%s1276_s0 + $0x128] sm:$0xff]  ;;  %s756_s14 = spop %755 }
  0x3e   :  { %v95_v16 = vmul.f32 %v646_v0, %v89_v51  ;;  %v96_v17 = vmul.f32 %v647_v5, %v89_v51  ;;  %v97_v18 = vmul.f32 %v648_v6, %v89_v51  ;;  %v98_v19 = vmul.f32 %v649_v7, %v89_v51  ;;  %v661_v51 = vld [vmem:[%s1276_s0 + $0x118] sm:$0xff]  ;;  %v667_v5 = vld [vmem:[%s1276_s0 + $0x148] sm:$0xff]  ;;  %s758_s15 = spop %757 }
  0x3f   :  { %v99_v22 = vadd.f32 %v91_v12, %v70_v1  ;;  %v100_v23 = vadd.f32 %v92_v13, %v71_v2  ;;  %v101_v24 = vadd.f32 %v93_v14, %v72_v3  ;;  %v102_v25 = vadd.f32 %v94_v15, %v73_v4  ;;  %v666_v4 = vld [vmem:[%s1276_s0 + $0x140] sm:$0xff]  ;;  %s760_s18 = spop %759 }
  0x40   :  { %v103_v29 = vadd.f32 %v95_v16, %v74_v8  ;;  %v104_v30 = vadd.f32 %v96_v17, %v75_v9  ;;  %v105_v31 = vadd.f32 %v97_v18, %v76_v10  ;;  %v106_v32 = vadd.f32 %v98_v19, %v77_v11  ;;  %v668_v10 = vld [vmem:[%s1276_s0 + $0x150] sm:$0xff]  ;;  %v669_v11 = vld [vmem:[%s1276_s0 + $0x158] sm:$0xff]  ;;  %v670_v12 = vld [vmem:[%s1276_s0 + $0x160] sm:$0xff]  ;;  %s762_s23 = spop %761 }
  0x41   :  { %v118_v36 = vstv %s974_s29  ;;  %v147_v37 = vstv %s748_s30  ;;  %v176_v38 = vstv %s750_s5  ;;  %v1001_v39 = vstv %s752_s10  ;;  %s764_s9 = spop %763 }
  0x42   :  { %v120_v40 = vmul.f32 %v650_v20, %v118_v36  ;;  %v121_v41 = vmul.f32 %v651_v21, %v118_v36  ;;  %v122_v42 = vmul.f32 %v652_v26, %v118_v36  ;;  %v123_v43 = vmul.f32 %v653_v27, %v118_v36  ;;  %v671_v17 = vld [vmem:[%s1276_s0 + $0x168] sm:$0xff]  ;;  %v672_v18 = vld [vmem:[%s1276_s0 + $0x170] sm:$0xff]  ;;  %v673_v19 = vld [vmem:[%s1276_s0 + $0x178] sm:$0xff]  ;;  %s766_s12 = spop %765 }
  0x43   :  { %v124_v46 = vmul.f32 %v654_v28, %v118_v36  ;;  %v125_v47 = vmul.f32 %v655_v33, %v118_v36  ;;  %v126_v48 = vmul.f32 %v656_v34, %v118_v36  ;;  %v127_v49 = vmul.f32 %v657_v35, %v118_v36  ;;  %v674_v28 = vld [vmem:[%s1276_s0 + $0x180] sm:$0xff]  ;;  %v676_v34 = vld [vmem:[%s1276_s0 + $0x190] sm:$0xff]  ;;  %v677_v35 = vld [vmem:[%s1276_s0 + $0x198] sm:$0xff] }
  0x44   :  { %v128_v53 = vadd.f32 %v120_v40, %v99_v22  ;;  %v129_v54 = vadd.f32 %v121_v41, %v100_v23  ;;  %v130_v55 = vadd.f32 %v122_v42, %v101_v24  ;;  %v131_v56 = vadd.f32 %v123_v43, %v102_v25  ;;  %v678_v36 = vld [vmem:[%s1276_s0 + $0x1a0] sm:$0xff]  ;;  %v680_v43 = vld [vmem:[%s1276_s0 + $0x1b0] sm:$0xff] }
  0x45   :  { %v132_v60 = vadd.f32 %v124_v46, %v103_v29  ;;  %v133_v61 = vadd.f32 %v125_v47, %v104_v30  ;;  %v134_v62 = vadd.f32 %v126_v48, %v105_v31  ;;  %v135_v63 = vadd.f32 %v127_v49, %v106_v32  ;;  %v675_v29 = vld [vmem:[%s1276_s0 + $0x188] sm:$0xff] }
  0x46   :  { %v149_v0 = vmul.f32 %v658_v44, %v147_v37  ;;  %v150_v1 = vmul.f32 %v659_v45, %v147_v37  ;;  %v151_v2 = vmul.f32 %v660_v50, %v147_v37  ;;  %v152_v3 = vmul.f32 %v661_v51, %v147_v37  ;;  %v681_v44 = vld [vmem:[%s1276_s0 + $0x1b8] sm:$0xff] }
  0x47   :  { %v153_v6 = vmul.f32 %v662_v52, %v147_v37  ;;  %v154_v7 = vmul.f32 %v663_v57, %v147_v37  ;;  %v155_v8 = vmul.f32 %v664_v58, %v147_v37  ;;  %v156_v9 = vmul.f32 %v665_v59, %v147_v37  ;;  %v682_v57 = vld [vmem:[%s1276_s0 + $0x1c0] sm:$0xff]  ;;  %v683_v58 = vld [vmem:[%s1276_s0 + $0x1c8] sm:$0xff] }
  0x48   :  { %v157_v13 = vadd.f32 %v149_v0, %v128_v53  ;;  %v158_v14 = vadd.f32 %v150_v1, %v129_v54  ;;  %v159_v15 = vadd.f32 %v151_v2, %v130_v55  ;;  %v160_v16 = vadd.f32 %v152_v3, %v131_v56  ;;  %v686_v0 = vld [vmem:[%s1276_s0 + $0x1e0] sm:$0xff] }
  0x49   :  { %v161_v20 = vadd.f32 %v153_v6, %v132_v60  ;;  %v162_v21 = vadd.f32 %v154_v7, %v133_v61  ;;  %v163_v22 = vadd.f32 %v155_v8, %v134_v62  ;;  %v164_v23 = vadd.f32 %v156_v9, %v135_v63  ;;  %v684_v63 = vld [vmem:[%s1276_s0 + $0x1d0] sm:$0xff]  ;;  %v689_v7 = vld [vmem:[%s1276_s0 + $0x1f8] sm:$0xff] }
  0x4a   :  { %v178_v24 = vmul.f32 %v666_v4, %v176_v38  ;;  %v179_v25 = vmul.f32 %v667_v5, %v176_v38  ;;  %v180_v26 = vmul.f32 %v668_v10, %v176_v38  ;;  %v181_v27 = vmul.f32 %v669_v11, %v176_v38  ;;  %v687_v5 = vld [vmem:[%s1276_s0 + $0x1e8] sm:$0xff]  ;;  %v688_v6 = vld [vmem:[%s1276_s0 + $0x1f0] sm:$0xff] }
  0x4b   :  { %v182_v30 = vmul.f32 %v670_v12, %v176_v38  ;;  %v183_v31 = vmul.f32 %v671_v17, %v176_v38  ;;  %v184_v32 = vmul.f32 %v672_v18, %v176_v38  ;;  %v185_v33 = vmul.f32 %v673_v19, %v176_v38  ;;  %v679_v38 = vld [vmem:[%s1276_s0 + $0x1a8] sm:$0xff] }
  0x4c   :  { %v186_v37 = vadd.f32 %v178_v24, %v157_v13  ;;  %v187_v40 = vadd.f32 %v179_v25, %v158_v14  ;;  %v188_v41 = vadd.f32 %v180_v26, %v159_v15  ;;  %v189_v42 = vadd.f32 %v181_v27, %v160_v16  ;;  %v690_v16 = vld [vmem:[%s1276_s0 + $0x200] sm:$0xff]  ;;  %v691_v17 = vld [vmem:[%s1276_s0 + $0x208] sm:$0xff] }
  0x4d   :  { %v190_v45 = vadd.f32 %v182_v30, %v161_v20  ;;  %v191_v46 = vadd.f32 %v183_v31, %v162_v21  ;;  %v192_v47 = vadd.f32 %v184_v32, %v163_v22  ;;  %v193_v48 = vadd.f32 %v185_v33, %v164_v23  ;;  %v692_v22 = vld [vmem:[%s1276_s0 + $0x210] sm:$0xff]  ;;  %v693_v23 = vld [vmem:[%s1276_s0 + $0x218] sm:$0xff]  ;;  %v694_v24 = vld [vmem:[%s1276_s0 + $0x220] sm:$0xff] }
  0x4e   :  { %v207_v49 = vmul.f32 %v674_v28, %v1001_v39  ;;  %v208_v50 = vmul.f32 %v675_v29, %v1001_v39  ;;  %v209_v51 = vmul.f32 %v676_v34, %v1001_v39  ;;  %v210_v52 = vmul.f32 %v677_v35, %v1001_v39  ;;  %v695_v29 = vld [vmem:[%s1276_s0 + $0x228] sm:$0xff]  ;;  %v696_v30 = vld [vmem:[%s1276_s0 + $0x230] sm:$0xff]  ;;  %v697_v31 = vld [vmem:[%s1276_s0 + $0x238] sm:$0xff] }
  0x4f   :  { %v211_v53 = vmul.f32 %v678_v36, %v1001_v39  ;;  %v212_v54 = vmul.f32 %v679_v38, %v1001_v39  ;;  %v213_v55 = vmul.f32 %v680_v43, %v1001_v39  ;;  %v214_v56 = vmul.f32 %v681_v44, %v1001_v39  ;;  %v685_v39 = vld [vmem:[%s1276_s0 + $0x1d8] sm:$0xff]  ;;  %v699_v38 = vld [vmem:[%s1276_s0 + $0x248] sm:$0xff] }
  0x50   :  { %v215_v59 = vadd.f32 %v207_v49, %v186_v37  ;;  %v216_v60 = vadd.f32 %v208_v50, %v187_v40  ;;  %v217_v61 = vadd.f32 %v209_v51, %v188_v41  ;;  %v218_v62 = vadd.f32 %v210_v52, %v189_v42  ;;  %v698_v42 = vld [vmem:[%s1276_s0 + $0x240] sm:$0xff] }
  0x51   :  { %v219_v1 = vadd.f32 %v211_v53, %v190_v45  ;;  %v220_v2 = vadd.f32 %v212_v54, %v191_v46  ;;  %v221_v3 = vadd.f32 %v213_v55, %v192_v47  ;;  %v222_v4 = vadd.f32 %v214_v56, %v193_v48  ;;  %v700_v47 = vld [vmem:[%s1276_s0 + $0x250] sm:$0xff]  ;;  %v701_v48 = vld [vmem:[%s1276_s0 + $0x258] sm:$0xff]  ;;  %v702_v49 = vld [vmem:[%s1276_s0 + $0x260] sm:$0xff] }
  0x52   :  { %v234_v8 = vstv %s1075_s13  ;;  %v263_v9 = vstv %s756_s14  ;;  %v292_v10 = vstv %s758_s15  ;;  %v1110_v11 = vstv %s760_s18 }
  0x53   :  { %v236_v12 = vmul.f32 %v682_v57, %v234_v8  ;;  %v237_v13 = vmul.f32 %v683_v58, %v234_v8  ;;  %v238_v14 = vmul.f32 %v684_v63, %v234_v8  ;;  %v239_v15 = vmul.f32 %v685_v39, %v234_v8  ;;  %v703_v54 = vld [vmem:[%s1276_s0 + $0x268] sm:$0xff]  ;;  %v704_v55 = vld [vmem:[%s1276_s0 + $0x270] sm:$0xff]  ;;  %v705_v56 = vld [vmem:[%s1276_s0 + $0x278] sm:$0xff] }
  0x54   :  { %v240_v18 = vmul.f32 %v686_v0, %v234_v8  ;;  %v241_v19 = vmul.f32 %v687_v5, %v234_v8  ;;  %v242_v20 = vmul.f32 %v688_v6, %v234_v8  ;;  %v243_v21 = vmul.f32 %v689_v7, %v234_v8  ;;  %v706_v0 = vld [vmem:[%s1276_s0 + $0x280] sm:$0xff]  ;;  %v708_v6 = vld [vmem:[%s1276_s0 + $0x290] sm:$0xff]  ;;  %v709_v7 = vld [vmem:[%s1276_s0 + $0x298] sm:$0xff] }
  0x55   :  { %v244_v25 = vadd.f32 %v236_v12, %v215_v59  ;;  %v245_v26 = vadd.f32 %v237_v13, %v216_v60  ;;  %v246_v27 = vadd.f32 %v238_v14, %v217_v61  ;;  %v247_v28 = vadd.f32 %v239_v15, %v218_v62  ;;  %v710_v8 = vld [vmem:[%s1276_s0 + $0x2a0] sm:$0xff]  ;;  %v712_v15 = vld [vmem:[%s1276_s0 + $0x2b0] sm:$0xff] }
  0x56   :  { %v248_v32 = vadd.f32 %v240_v18, %v219_v1  ;;  %v249_v33 = vadd.f32 %v241_v19, %v220_v2  ;;  %v250_v34 = vadd.f32 %v242_v20, %v221_v3  ;;  %v251_v35 = vadd.f32 %v243_v21, %v222_v4  ;;  %v707_v1 = vld [vmem:[%s1276_s0 + $0x288] sm:$0xff] }
  0x57   :  { %v265_v36 = vmul.f32 %v690_v16, %v263_v9  ;;  %v266_v37 = vmul.f32 %v691_v17, %v263_v9  ;;  %v267_v40 = vmul.f32 %v692_v22, %v263_v9  ;;  %v268_v41 = vmul.f32 %v693_v23, %v263_v9  ;;  %v713_v16 = vld [vmem:[%s1276_s0 + $0x2b8] sm:$0xff] }
  0x58   :  { %v269_v43 = vmul.f32 %v694_v24, %v263_v9  ;;  %v270_v44 = vmul.f32 %v695_v29, %v263_v9  ;;  %v271_v45 = vmul.f32 %v696_v30, %v263_v9  ;;  %v272_v46 = vmul.f32 %v697_v31, %v263_v9  ;;  %v714_v29 = vld [vmem:[%s1276_s0 + $0x2c0] sm:$0xff]  ;;  %v715_v31 = vld [vmem:[%s1276_s0 + $0x2c8] sm:$0xff] }
  0x59   :  { %v273_v50 = vadd.f32 %v265_v36, %v244_v25  ;;  %v274_v51 = vadd.f32 %v266_v37, %v245_v26  ;;  %v275_v52 = vadd.f32 %v267_v40, %v246_v27  ;;  %v276_v53 = vadd.f32 %v268_v41, %v247_v28  ;;  %v718_v37 = vld [vmem:[%s1276_s0 + $0x2e0] sm:$0xff]  ;;  %v719_v40 = vld [vmem:[%s1276_s0 + $0x2e8] sm:$0xff]  ;;  %v720_v41 = vld [vmem:[%s1276_s0 + $0x2f0] sm:$0xff] }
  0x5a   :  { %v277_v57 = vadd.f32 %v269_v43, %v248_v32  ;;  %v278_v58 = vadd.f32 %v270_v44, %v249_v33  ;;  %v279_v59 = vadd.f32 %v271_v45, %v250_v34  ;;  %v280_v60 = vadd.f32 %v272_v46, %v251_v35  ;;  %v716_v32 = vld [vmem:[%s1276_s0 + $0x2d0] sm:$0xff]  ;;  %v717_v33 = vld [vmem:[%s1276_s0 + $0x2d8] sm:$0xff] }
  0x5b   :  { %v294_v61 = vmul.f32 %v698_v42, %v292_v10  ;;  %v295_v62 = vmul.f32 %v699_v38, %v292_v10  ;;  %v296_v63 = vmul.f32 %v700_v47, %v292_v10  ;;  %v297_v39 = vmul.f32 %v701_v48, %v292_v10  ;;  %v721_v44 = vld [vmem:[%s1276_s0 + $0x2f8] sm:$0xff] }
  0x5c   :  { %v298_v2 = vmul.f32 %v702_v49, %v292_v10  ;;  %v299_v3 = vmul.f32 %v703_v54, %v292_v10  ;;  %v300_v4 = vmul.f32 %v704_v55, %v292_v10  ;;  %v301_v5 = vmul.f32 %v705_v56, %v292_v10  ;;  %v711_v10 = vld [vmem:[%s1276_s0 + $0x2a8] sm:$0xff]  ;;  %v724_v55 = vld [vmem:[%s1276_s0 + $0x310] sm:$0xff]  ;;  %v725_v56 = vld [vmem:[%s1276_s0 + $0x318] sm:$0xff] }
  0x5d   :  { %v302_v9 = vadd.f32 %v294_v61, %v273_v50  ;;  %v303_v12 = vadd.f32 %v295_v62, %v274_v51  ;;  %v304_v13 = vadd.f32 %v296_v63, %v275_v52  ;;  %v305_v14 = vadd.f32 %v297_v39, %v276_v53  ;;  %v722_v50 = vld [vmem:[%s1276_s0 + $0x300] sm:$0xff]  ;;  %v723_v51 = vld [vmem:[%s1276_s0 + $0x308] sm:$0xff]  ;;  %v728_v63 = vld [vmem:[%s1276_s0 + $0x330] sm:$0xff] }
  0x5e   :  { %v306_v17 = vadd.f32 %v298_v2, %v277_v57  ;;  %v307_v18 = vadd.f32 %v299_v3, %v278_v58  ;;  %v308_v19 = vadd.f32 %v300_v4, %v279_v59  ;;  %v309_v20 = vadd.f32 %v301_v5, %v280_v60  ;;  %v726_v57 = vld [vmem:[%s1276_s0 + $0x320] sm:$0xff]  ;;  %v727_v62 = vld [vmem:[%s1276_s0 + $0x328] sm:$0xff] }
  0x5f   :  { %v323_v21 = vmul.f32 %v706_v0, %v1110_v11  ;;  %v324_v22 = vmul.f32 %v707_v1, %v1110_v11  ;;  %v325_v23 = vmul.f32 %v708_v6, %v1110_v11  ;;  %v326_v24 = vmul.f32 %v709_v7, %v1110_v11  ;;  %v730_v39 = vld [vmem:[%s1276_s0 + $0x340] sm:$0xff]  ;;  %v731_v5 = vld [vmem:[%s1276_s0 + $0x348] sm:$0xff]  ;;  %v732_v6 = vld [vmem:[%s1276_s0 + $0x350] sm:$0xff] }
  0x60   :  { %v327_v25 = vmul.f32 %v710_v8, %v1110_v11  ;;  %v328_v26 = vmul.f32 %v711_v10, %v1110_v11  ;;  %v329_v27 = vmul.f32 %v712_v15, %v1110_v11  ;;  %v330_v28 = vmul.f32 %v713_v16, %v1110_v11  ;;  %v733_v7 = vld [vmem:[%s1276_s0 + $0x358] sm:$0xff]  ;;  %v734_v10 = vld [vmem:[%s1276_s0 + $0x360] sm:$0xff]  ;;  %v735_v15 = vld [vmem:[%s1276_s0 + $0x368] sm:$0xff] }
  0x61   :  { %v331_v30 = vadd.f32 %v323_v21, %v302_v9  ;;  %v332_v34 = vadd.f32 %v324_v22, %v303_v12  ;;  %v333_v11 = vadd.f32 %v325_v23, %v304_v13  ;;  %v334_v35 = vadd.f32 %v326_v24, %v305_v14  ;;  %v729_v8 = vld [vmem:[%s1276_s0 + $0x338] sm:$0xff] }
  0x62   :  { %v335_v36 = vadd.f32 %v327_v25, %v306_v17  ;;  %v336_v42 = vadd.f32 %v328_v26, %v307_v18  ;;  %v337_v38 = vadd.f32 %v329_v27, %v308_v19  ;;  %v338_v43 = vadd.f32 %v330_v28, %v309_v20  ;;  %v736_v20 = vld [vmem:[%s1276_s0 + $0x370] sm:$0xff] }
  0x63   :  { %v350_v45 = vstv %s762_s23  ;;  %v379_v58 = vstv %s764_s9  ;;  %v408_v0 = vstv %s766_s12 }
  0x64   :  { %v352_v46 = vmul.f32 %v714_v29, %v350_v45  ;;  %v353_v47 = vmul.f32 %v715_v31, %v350_v45  ;;  %v354_v48 = vmul.f32 %v716_v32, %v350_v45  ;;  %v355_v49 = vmul.f32 %v717_v33, %v350_v45 }
  0x65   :  { %v356_v52 = vmul.f32 %v718_v37, %v350_v45  ;;  %v357_v53 = vmul.f32 %v719_v40, %v350_v45  ;;  %v358_v54 = vmul.f32 %v720_v41, %v350_v45  ;;  %v359_v59 = vmul.f32 %v721_v44, %v350_v45 }
  0x66   :  { %v360_v60 = vadd.f32 %v352_v46, %v331_v30  ;;  %v361_v61 = vadd.f32 %v353_v47, %v332_v34  ;;  %v362_v1 = vadd.f32 %v354_v48, %v333_v11  ;;  %v363_v2 = vadd.f32 %v355_v49, %v334_v35 }
  0x67   :  { %v364_v3 = vadd.f32 %v356_v52, %v335_v36  ;;  %v365_v4 = vadd.f32 %v357_v53, %v336_v42  ;;  %v381_v9 = vmul.f32 %v722_v50, %v379_v58  ;;  %v382_v12 = vmul.f32 %v723_v51, %v379_v58  ;;  %v737_v36 = vld [vmem:[%s1276_s0 + $0x378] sm:$0xff]  ;;  %s843_s0 = smov [#allocation2]  }
  0x68   :  { %v383_v13 = vmul.f32 %v724_v55, %v379_v58  ;;  %v384_v14 = vmul.f32 %v725_v56, %v379_v58  ;;  %v366_v16 = vadd.f32 %v358_v54, %v337_v38  ;;  %v385_v17 = vmul.f32 %v726_v57, %v379_v58  ;;  %s626_s2 = sshll.u32 %s843_s0, 4  ;;  %s627_s2 = int_to_ptr.vmem [resolvable:$true] %s626_s2 }
  0x69   :  { %v386_v18 = vmul.f32 %v727_v62, %v379_v58  ;;  %v387_v19 = vmul.f32 %v728_v63, %v379_v58  ;;  %v410_v21 = vmul.f32 %v730_v39, %v408_v0  ;;  %v411_v22 = vmul.f32 %v731_v5, %v408_v0  ;;  %s817_s16 = scalar_lea.vmem %s627_s2, 16  ;;  %s821_s3 = scalar_lea.vmem %s627_s2, 32 }
  0x6a   :  { %v412_v23 = vmul.f32 %v732_v6, %v408_v0  ;;  %v413_v24 = vmul.f32 %v733_v7, %v408_v0  ;;  %v367_v25 = vadd.f32 %v359_v59, %v338_v43  ;;  %v388_v26 = vmul.f32 %v729_v8, %v379_v58  ;;  %p818_p0 = scmp.ne.s32.totalorder %s627_s2, %s817_s16  ;;  %p822_p1 = scmp.lt.s32.totalorder %s627_s2, %s627_s2 }
  0x6b   :  { %v414_v27 = vmul.f32 %v734_v10, %v408_v0  ;;  %v415_v28 = vmul.f32 %v735_v15, %v408_v0  ;;  %v389_v29 = vadd.f32 %v381_v9, %v360_v60  ;;  %v390_v30 = vadd.f32 %v382_v12, %v361_v61  ;;  %p823_p2 = scmp.lt.s32.totalorder %s821_s3, %s817_s16 }
  0x6c   :  { %v391_v31 = vadd.f32 %v383_v13, %v362_v1  ;;  %v392_v32 = vadd.f32 %v384_v14, %v363_v2  ;;  %v416_v33 = vmul.f32 %v736_v20, %v408_v0  ;;  %v393_v34 = vadd.f32 %v385_v17, %v364_v3 }
  0x6d   :  { %v394_v11 = vadd.f32 %v386_v18, %v365_v4  ;;  %v395_v35 = vadd.f32 %v387_v19, %v366_v16  ;;  %v418_v37 = vadd.f32 %v410_v21, %v389_v29  ;;  %v419_v40 = vadd.f32 %v411_v22, %v390_v30  ;;  %p824_p3 = por %p823_p2, %p822_p1 }
  0x6e   :  { %v420_v41 = vadd.f32 %v412_v23, %v391_v31  ;;  %v421_v42 = vadd.f32 %v413_v24, %v392_v32  ;;  %v422_v38 = vadd.f32 %v414_v27, %v393_v34  ;;  %v417_v48 = vmul.f32 %v737_v36, %v408_v0 }
  0x6f   :  { %v423_v43 = vadd.f32 %v415_v28, %v394_v11  ;;  %v426_v44 = vsub.f32 0.0, %v418_v37  ;;  %v427_v45 = vsub.f32 0.0, %v419_v40  ;;  %v396_v50 = vadd.f32 %v388_v26, %v367_v25  ;;  %p825_p4 = pnand %p824_p3, %p818_p0 }
  0x70   :  { %v428_v46 = vsub.f32 0.0, %v420_v41  ;;  %v429_v47 = vsub.f32 0.0, %v421_v42  ;;  %v430_v49 = vsub.f32 0.0, %v422_v38  ;;  %v424_v54 = vadd.f32 %v416_v33, %v395_v35 }
  0x71   :  { %v434_v51 = vmul.f32 1.442695, %v426_v44  ;;  %v436_v52 = vmul.f32 1.442695, %v427_v45  ;;  %v431_v57 = vsub.f32 0.0, %v423_v43  ;;  %v425_v59 = vadd.f32 %v417_v48, %v396_v50 }
  0x72   :  { %v438_v53 = vmul.f32 1.442695, %v428_v46  ;;  %v440_v55 = vmul.f32 1.442695, %v429_v47  ;;  %v442_v56 = vmul.f32 1.442695, %v430_v49 }
  0x73   :  { %773 = vpow2.f32 %v434_v51  ;;  %v432_v58 = vsub.f32 0.0, %v424_v54  ;;  %v444_v60 = vmul.f32 1.442695, %v431_v57  ;;  %v433_v62 = vsub.f32 0.0, %v425_v59 }
  0x74   :  { %775 = vpow2.f32 %v436_v52 }
  0x75   :  { %777 = vpow2.f32 %v438_v53  ;;  %v446_v61 = vmul.f32 1.442695, %v432_v58  ;;  %v448_v39 = vmul.f32 1.442695, %v433_v62 }
  0x76   :  { %779 = vpow2.f32 %v440_v55 }
  0x77   :  { %781 = vpow2.f32 %v442_v56 }
  0x78   :  { %783 = vpow2.f32 %v444_v60 }
  0x79   :  { %785 = vpow2.f32 %v446_v61 }
  0x7a   :  { %787 = vpow2.f32 %v448_v39 }
  0x7d   :  { %v774_v63 = vpop.eup %773 }
  0x7e   :  { %v776_v0 = vpop.eup %775  ;;  %v450_v2 = vadd.f32 1.0, %v774_v63 }
  0x7f   :  { %v778_v1 = vpop.eup %777  ;;  %v451_v3 = vadd.f32 1.0, %v776_v0 }
  0x80   :  { %v780_v4 = vpop.eup %779  ;;  %v452_v7 = vadd.f32 1.0, %v778_v1 }
  0x81   :  { %v477_v5 = vpop.permute.xlu1 %476  ;;  %v543_v6 = vpop.permute.xlu0 %542  ;;  %789 = vrcp.f32 %v451_v3  ;;  %v453_v9 = vadd.f32 1.0, %v780_v4 }
  0x82   :  { %v782_v8 = vpop.eup %781  ;;  %791 = vrcp.f32 %v450_v2 }
  0x83   :  { %793 = vrcp.f32 %v452_v7  ;;  %v454_v14 = vadd.f32 1.0, %v782_v8  ;;  %v784_v10 = vpop.eup %783 }
  0x84   :  { %795 = vrcp.f32 %v453_v9  ;;  %v786_v15 = vpop.eup %785  ;;  %v455_v18 = vadd.f32 1.0, %v784_v10 }
  0x85   :  { %v482_v12 = vpop.permute.xlu1 %481  ;;  %v547_v13 = vpop.permute.xlu0 %546  ;;  %797 = vrcp.f32 %v454_v14  ;;  %v456_v19 = vadd.f32 1.0, %v786_v15 }
  0x86   :  { %v788_v20 = vpop.eup %787  ;;  %799 = vrcp.f32 %v455_v18 }
  0x87   :  { %801 = vrcp.f32 %v456_v19  ;;  %v457_v26 = vadd.f32 1.0, %v788_v20 }
  0x89   :  { %v487_v16 = vpop.permute.xlu1 %486  ;;  %v551_v17 = vpop.permute.xlu0 %550  ;;  %803 = vrcp.f32 %v457_v26 }
  0x8b   :  { %v790_v21 = vpop.eup %789 }
  0x8c   :  { %v792_v24 = vpop.eup %791  ;;  %v515_v27 = vmul.f32 %v790_v21, %v482_v12  ;;  %v574_v28 = vmul.f32 %v790_v21, %v547_v13 }
  0x8d   :  { %v492_v22 = vpop.permute.xlu1 %491  ;;  %v555_v23 = vpop.permute.xlu0 %554  ;;  %v514_v32 = vmul.f32 %v792_v24, %v477_v5  ;;  %v573_v33 = vmul.f32 %v792_v24, %v543_v6 }
  0x8e   :  { %v794_v25 = vpop.eup %793 }
  0x8f   :  { %v796_v29 = vpop.eup %795  ;;  %v516_v34 = vmul.f32 %v794_v25, %v487_v16  ;;  %v575_v11 = vmul.f32 %v794_v25, %v551_v17  ;;  %v522_v36 = vadd.f32 %v515_v27, %v514_v32  ;;  %v581_v37 = vadd.f32 %v574_v28, %v573_v33 }
  0x90   :  { %v798_v35 = vpop.eup %797  ;;  %v517_v40 = vmul.f32 %v796_v29, %v492_v22  ;;  %v576_v41 = vmul.f32 %v796_v29, %v555_v23 }
  0x91   :  { %v497_v30 = vpop.permute.xlu1 %496  ;;  %v559_v31 = vpop.permute.xlu0 %558  ;;  %v523_v43 = vadd.f32 %v522_v36, %v516_v34  ;;  %v582_v44 = vadd.f32 %v581_v37, %v575_v11 }
  0x92   :  { %v518_v45 = vmul.f32 %v798_v35, %v497_v30  ;;  %v577_v46 = vmul.f32 %v798_v35, %v559_v31  ;;  %v800_v47 = vpop.eup %799 }
  0x93   :  { %v524_v48 = vadd.f32 %v523_v43, %v517_v40  ;;  %v583_v49 = vadd.f32 %v582_v44, %v576_v41  ;;  %v802_v52 = vpop.eup %801 }
  0x94   :  { %v804_v61 = vpop.eup %803 }
  0x95   :  { %v502_v42 = vpop.permute.xlu1 %501  ;;  %v563_v38 = vpop.permute.xlu0 %562  ;;  %v525_v55 = vadd.f32 %v524_v48, %v518_v45  ;;  %v584_v56 = vadd.f32 %v583_v49, %v577_v46 }
  0x96   :  { %v519_v50 = vmul.f32 %v800_v47, %v502_v42  ;;  %v578_v51 = vmul.f32 %v800_v47, %v563_v38 }
  0x98   :  { %v526_v59 = vadd.f32 %v525_v55, %v519_v50  ;;  %v585_v60 = vadd.f32 %v584_v56, %v578_v51 }
  0x99   :  { %v507_v53 = vpop.permute.xlu1 %506  ;;  %v567_v54 = vpop.permute.xlu0 %566 }
  0x9a   :  { %v520_v57 = vmul.f32 %v802_v52, %v507_v53  ;;  %v579_v58 = vmul.f32 %v802_v52, %v567_v54 }
  0x9c   :  { %v527_v39 = vadd.f32 %v526_v59, %v520_v57  ;;  %v586_v0 = vadd.f32 %v585_v60, %v579_v58 }
  0x9d   :  { %v512_v62 = vpop.permute.xlu1 %511  ;;  %v571_v63 = vpop.permute.xlu0 %570 }
  0x9e   :  { %v521_v1 = vmul.f32 %v804_v61, %v512_v62  ;;  %v580_v2 = vmul.f32 %v804_v61, %v571_v63 }
  0xa0   :  { %v528_v3 = vadd.f32 %v527_v39, %v521_v1  ;;  %v587_v4 = vadd.f32 %v586_v0, %v580_v2 }
  0xa2   :  { %v529_v5 = vrot.slane %v528_v3, 4  ;;  %v588_v6 = vrot.slane %v587_v4, 4  ;;  %v603_v26 = vpop.permute.xlu0 %602 }
  0xa4   :  { %v530_v7 = vadd.f32 %v529_v5, %v528_v3  ;;  %v589_v8 = vadd.f32 %v588_v6, %v587_v4 }
  0xa6   :  { %v531_v9 = vrot.slane %v530_v7, 2  ;;  %v590_v12 = vrot.slane %v589_v8, 2 }
  0xa8   :  { %v532_v13 = vadd.f32 %v531_v9, %v530_v7  ;;  %v591_v14 = vadd.f32 %v590_v12, %v589_v8 }
  0xaa   :  { %v533_v10 = vrot.slane %v532_v13, 1  ;;  %v592_v15 = vrot.slane %v591_v14, 1 }
  0xac   :  { %v534_v16 = vadd.f32 %v533_v10, %v532_v13  ;;  %v593_v17 = vadd.f32 %v592_v15, %v591_v14 }
  0xae   :  { %v535_v18 = vsub.f32 0.0, %v534_v16  ;;  %v594_v19 = vsub.f32 0.0, %v593_v17 }
  0xb0   :  { %v536_v20 = vmul.f32 1.442695, %v535_v18  ;;  %v595_v21 = vmul.f32 1.442695, %v594_v19 }
  0xb2   :  { %805 = vpow2.f32 %v536_v20 }
  0xb3   :  { %807 = vpow2.f32 %v595_v21 }
  0xbc   :  { %v806_v22 = vpop.eup %805 }
  0xbd   :  { %v808_v23 = vpop.eup %807  ;;  %v538_v24 = vadd.f32 1.0, %v806_v22 }
  0xbe   :  { %v597_v25 = vadd.f32 1.0, %v808_v23 }
  0xbf   :  { %809 = vrcp.f32 %v538_v24 }
  0xc0   :  { %811 = vrcp.f32 %v597_v25 }
  0xc9   :  { %v810_v27 = vpop.eup %809 }
  0xca   :  { %v812_v28 = vpop.eup %811  ;;  %v605_v30 = vmul.f32 %v810_v27, %v603_v26 }
  0xcb   :  { %v606_v29 = vmul.f32 %v812_v28, %v603_v26 }
  0xcd   :  { %v608_v31 = vrot.slane %v606_v29, 1 }
  0xcf   :  { %v610_v32 = vadd.f32 %v608_v31, %v605_v30 }
  0xd1   :  { %v611_v33 = vsub.f32 0.0, %v610_v32 }
  0xd3   :  { %v612_v34 = vmul.f32 1.442695, %v611_v33 }
  0xd5   :  { %813 = vpow2.f32 %v612_v34 }
  0xdf   :  { %v814_v11 = vpop.eup %813 }
  0xe0   :  { %v614_v35 = vadd.f32 1.0, %v814_v11 }
  0xe2   :  { %815 = vrcp.f32 %v614_v35 }
  0xec   :  { %v816_v36 = vpop.eup %815 }
  0xed   :  { %v617_v37 = vmul.f32 2.0, %v816_v36 }
  0xef   :  { %v738_v40 = vadd.f32 -1.0, %v617_v37 }
  0xf1   :  { %619 = vst [vmem:[#allocation2] sm:$0x1] %v738_v40 }
  0xf2   :  { %828 = shalt.err (!%p825_p4)
}
  0xf3   :  { %s829_s19 = scalar_lea.hbm %s1280_s4, 16 }
  0xf4   :  { %p830_p5 = scmp.ne.s32.totalorder %s1280_s4, %s829_s19  ;;  %p833_p6 = scmp.lt.u32.totalorder %s829_s19, %s1280_s4 }
  0xf6   :  { %p835_p7 = pnand %p833_p6, %p830_p5 }
  0xf8   :  { %838 = shalt.err (!%p835_p7)
}
  0xf9   :  { %629 = dma.vmem_to_hbm [thread:$0]  %s627_s2, 16, %s1280_s4, [#allocation3]  }
  0xfa   :  { %839 = dma.done.wait [#allocation3], 16  }
  0xfb   :  { %840 = vsyncadd [#allocation3], 4294967280 }
  0xfc   :  { %633 = vsyncpa [#allocation3], 1 }

</bundles_post_ra>
